<compile_context>
chip_gen: v5e
topology: v5e:2x2
jax: 0.10.0
libtpu: 0.0.40
codegen_flags: <defaults>
</compile_context>

<pallas_src>
import functools

import jax
import jax.numpy as jnp
from jax.experimental import pallas as pl
from jax.experimental.pallas import tpu as pltpu


def _irm_penalty_kernel(y_ref, labels_ref, even_ref, odd_ref, *,
                        tiles_per_split, n_rows):
    s = pl.program_id(0)          # split (parallel; maps onto v7x's two TensorCores)
    i = pl.program_id(1)          # row tile within the split (sequential reduction)

    @pl.when(i == 0)
    def _init():
        even_ref[...] = jnp.zeros_like(even_ref)
        odd_ref[...] = jnp.zeros_like(odd_ref)

    y = y_ref[...].astype(jnp.float32)        # (TILE_ROWS, C) logits
    labels = labels_ref[...]                  # (TILE_ROWS, 1) int32
    tn, c = y.shape

    # d CE_i / d scale at scale = 1:
    #   g_i = sum_c softmax(y_i)_c * y_{i,c} - y_{i, label_i}
    # Wide (tn, C) work: sub, exp, mul, compare, select (+ lane reductions on
    # the XLU). Softmax probabilities / float one-hot are never materialized.
    m = jnp.max(y, axis=-1, keepdims=True)
    e = jnp.exp(y - m)
    z = jnp.sum(e, axis=-1, keepdims=True)
    sum_ey = jnp.sum(e * y, axis=-1, keepdims=True)
    col = jax.lax.broadcasted_iota(jnp.int32, (tn, c), 1)
    picked = jnp.sum(jnp.where(col == labels, y, 0.0), axis=-1, keepdims=True)
    g = sum_ey * pl.reciprocal(z, approx=False) - picked      # (TILE_ROWS, 1)

    # Global-row validity mask: handles the ragged tail tile and any clamped
    # duplicate tile without wrapper-side padding. tile_rows is a multiple of
    # 8, so the tile's first global row is always even and local parity equals
    # global parity.
    local = jax.lax.broadcasted_iota(jnp.int32, (tn, 1), 0)
    in_range = (s * tiles_per_split + i) * tn + local < n_rows
    is_even = (local % 2) == 0

    # Select (not multiply) so NaN/Inf from unspecified tail rows is discarded.
    g_even = jnp.where(in_range & is_even, g, 0.0)
    g_odd = jnp.where(in_range & jnp.logical_not(is_even), g, 0.0)

    even_ref[...] += jnp.sum(g_even, axis=0, keepdims=True).reshape(even_ref.shape)
    odd_ref[...] += jnp.sum(g_odd, axis=0, keepdims=True).reshape(odd_ref.shape)


def _chip_config():
    """Generation-aware (tile_target_bytes, vmem_limit_bytes, max_splits)."""
    kind = ""
    try:
        kind = jax.devices()[0].device_kind.lower()
    except Exception:
        pass
    # 2 TensorCores worth splitting across: v7x (and megacore v4/v5p).
    max_splits = 2 if ("v7" in kind or "v4" in kind or "v5p" in kind) else 1
    if "v7" in kind:
        # 64 MiB VMEM/TC but 3.2 TB/s HBM: ~4 MiB tiles, stay well under the
        # 32 MiB scoped limit with double-buffered inputs.
        return 4 * 1024 * 1024, 32 * 1024 * 1024, max_splits
    if kind:
        # v5e / v6e: 128 MiB VMEM, so bigger tiles amortize the ~0.35us/step
        # fixed overhead.
        return 8 * 1024 * 1024, 64 * 1024 * 1024, max_splits
    # Unknown backend (e.g. interpret mode): conservative defaults.
    return 4 * 1024 * 1024, 32 * 1024 * 1024, 1


def _choose_tile_rows(n_rows, n_cols, itemsize, target_bytes, max_tile_rows=None):
    """Row count: dtype-aligned sublane multiple, ~target_bytes of f32 footprint."""
    mult = 8 * max(1, 4 // max(1, itemsize))     # f32: 8, bf16: 16, int8/fp8: 32
    bytes_per_row = max(1, n_cols) * 4           # f32 compute footprint governs VMEM
    rows = (target_bytes // bytes_per_row) // mult * mult
    rows = max(mult, min(rows, 2048))            # cap keeps (rows, 1) temporaries small
    n_rows_up = -(-n_rows // mult) * mult
    rows = min(rows, n_rows_up)
    if max_tile_rows is not None:
        rows = min(rows, max(mult, (max_tile_rows // mult) * mult))
    return int(rows)


def invariance_penalty_loss(y: jax.Array, labels: jax.Array,
                            *, max_tile_rows=None, splits=None) -> jax.Array:
    """Pallas implementation of InvariancePenaltyLoss.forward (scale = 1.0)."""
    n, c = y.shape
    assert n >= 2, "need at least one even-index and one odd-index row"
    if not jnp.issubdtype(y.dtype, jnp.floating):
        y = y.astype(jnp.float32)                # otherwise stream logits in their own dtype

    target_bytes, vmem_limit, max_splits = _chip_config()
    tile_rows = _choose_tile_rows(n, c, y.dtype.itemsize, target_bytes, max_tile_rows)
    n_tiles = -(-n // tile_rows)
    if splits is None:
        splits = max_splits
    splits = max(1, min(int(splits), n_tiles))
    tiles_per_split = -(-n_tiles // splits)

    labels2d = labels.reshape(n).astype(jnp.int32).reshape(n, 1)

    last_tile = n_tiles - 1

    def row_block(s, i):
        # Clamp so a grid step past the real tile count re-reads the last tile;
        # its rows are fully masked out in-kernel by the validity mask.
        return (jnp.minimum(s * tiles_per_split + i, last_tile), 0)

    kernel = functools.partial(_irm_penalty_kernel,
                               tiles_per_split=tiles_per_split, n_rows=n)

    even_parts, odd_parts = pl.pallas_call(
        kernel,
        out_shape=(jax.ShapeDtypeStruct((splits, 1, 1), jnp.float32),
                   jax.ShapeDtypeStruct((splits, 1, 1), jnp.float32)),
        grid_spec=pltpu.PrefetchScalarGridSpec(
            num_scalar_prefetch=0,
            grid=(splits, tiles_per_split),
            in_specs=[
                pl.BlockSpec((tile_rows, c), row_block),
                pl.BlockSpec((tile_rows, 1), row_block),
            ],
            out_specs=[
                pl.BlockSpec((1, 1, 1), lambda s, i: (s, 0, 0)),
                pl.BlockSpec((1, 1, 1), lambda s, i: (s, 0, 0)),
            ]),
        compiler_params=pltpu.CompilerParams(
            dimension_semantics=("parallel", "arbitrary"),
            vmem_limit_bytes=vmem_limit),
        cost_estimate=pl.CostEstimate(
            flops=6 * n * c,
            transcendentals=n * c,
            bytes_accessed=n * c * y.dtype.itemsize + n * 4 + splits * 8),
    )(y, labels2d)

    n_even = (n + 1) // 2    # rows y[::2]
    n_odd = n // 2           # rows y[1::2]
    grad_even = jnp.sum(even_parts) / float(n_even)
    grad_odd = jnp.sum(odd_parts) / float(n_odd)
    return grad_even * grad_odd


def _reference_penalty(y, labels):
    """Pure-JAX reference using autodiff, mirroring the PyTorch module."""
    def ce(logits_scaled, lab):
        lse = jax.nn.logsumexp(logits_scaled, axis=-1)
        picked = jnp.take_along_axis(logits_scaled, lab[:, None], axis=-1)[:, 0]
        return jnp.mean(lse - picked)

    def loss_env(scale, ys, labs):
        return ce(ys * scale, labs)

    g1 = jax.grad(loss_env)(1.0, y[::2], labels[::2])
    g2 = jax.grad(loss_env)(1.0, y[1::2], labels[1::2])
    return g1 * g2


if __name__ == "__main__":
    key = jax.random.PRNGKey(0)
    k1, k2 = jax.random.split(key)

    # 1) Gridded/split path with a clamped tail tile: N=24 rows, 8-row tiles,
    #    splits=2 -> grid (2, 2); split 1's last block index clamps to the last
    #    real tile and is fully masked out in-kernel.
    N, C = 24, 16
    y = jax.random.normal(k1, (N, C), dtype=jnp.float32)
    labels = jax.random.randint(k2, (N,), 0, C, dtype=jnp.int32)
    out = jax.block_until_ready(
        invariance_penalty_loss(y, labels, max_tile_rows=8, splits=2))
    ref = jax.block_until_ready(_reference_penalty(y, labels))
    assert jnp.allclose(out, ref, rtol=1e-4, atol=1e-5), (out, ref)

    # 2) Default tiling; ragged (non multiple-of-8) batch handled in-kernel
    #    with no wrapper-side jnp.pad.
    N2, C2 = 10, 16
    y2 = jax.random.normal(k1, (N2, C2), dtype=jnp.float32)
    labels2 = jax.random.randint(k2, (N2,), 0, C2, dtype=jnp.int32)
    out2 = jax.block_until_ready(invariance_penalty_loss(y2, labels2))
    ref2 = jax.block_until_ready(_reference_penalty(y2, labels2))
    assert jnp.allclose(out2, ref2, rtol=1e-4, atol=1e-5), (out2, ref2)

    # 3) bf16 logits stream in bf16 (16-row sublane multiple), f32 math in-kernel.
    y3 = y.astype(jnp.bfloat16)
    out3 = jax.block_until_ready(invariance_penalty_loss(y3, labels))
    ref3 = jax.block_until_ready(_reference_penalty(y3.astype(jnp.float32), labels))
    assert jnp.allclose(out3, ref3, rtol=1e-3, atol=1e-4), (out3, ref3)

    print("KERNEL_OK")
</pallas_src>

<mosaic_0001>
module attributes {stable_mosaic.version = 11 : i64} {
  func.func @_irm_penalty_kernel(%arg0: i32, %arg1: i32, %arg2: memref<8x16xf32, #tpu.memory_space<vmem>>, %arg3: memref<8x1xi32, #tpu.memory_space<vmem>>, %arg4: memref<1x1x1xf32, #tpu.memory_space<vmem>>, %arg5: memref<1x1x1xf32, #tpu.memory_space<vmem>>) attributes {dimension_semantics = [#tpu.dimension_semantics<parallel>, #tpu.dimension_semantics<arbitrary>], iteration_bounds = array<i64: 2, 2>, scalar_prefetch = 0 : i64, scratch_operands = 0 : i64, tpu.core_type = #tpu.core_type<tc>, window_params = [{transform_indices = @transform_0, window_bounds = array<i64: 8, 16>}, {transform_indices = @transform_1, window_bounds = array<i64: 8, 1>}, {transform_indices = @transform_2, window_bounds = array<i64: 1, 1, 1>}, {transform_indices = @transform_3, window_bounds = array<i64: 1, 1, 1>}]} {
    %c0_i32 = arith.constant 0 : i32
    %0 = arith.cmpi eq, %arg1, %c0_i32 : i32
    %1 = arith.extui %0 : i1 to i32
    %c0_i32_0 = arith.constant 0 : i32
    %2 = arith.cmpi ne, %1, %c0_i32_0 : i32
    scf.if %2 {
      %cst_31 = arith.constant 0.000000e+00 : f32
      %70 = vector.broadcast %cst_31 : f32 to vector<1x1x1xf32>
      %c0_32 = arith.constant 0 : index
      %c0_33 = arith.constant 0 : index
      %c0_34 = arith.constant 0 : index
      %71 = vector.load %arg4[%c0_32, %c0_33, %c0_34] : memref<1x1x1xf32, #tpu.memory_space<vmem>>, vector<1x1x1xf32>
      tpu.vector_store %arg4[%c0_32, %c0_33, %c0_34], %70 {strides = array<i32>} : memref<1x1x1xf32, #tpu.memory_space<vmem>>, vector<1x1x1xf32>,
      %cst_35 = arith.constant 0.000000e+00 : f32
      %72 = vector.broadcast %cst_35 : f32 to vector<1x1x1xf32>
      %c0_36 = arith.constant 0 : index
      %c0_37 = arith.constant 0 : index
      %c0_38 = arith.constant 0 : index
      %73 = vector.load %arg5[%c0_36, %c0_37, %c0_38] : memref<1x1x1xf32, #tpu.memory_space<vmem>>, vector<1x1x1xf32>
      tpu.vector_store %arg5[%c0_36, %c0_37, %c0_38], %72 {strides = array<i32>} : memref<1x1x1xf32, #tpu.memory_space<vmem>>, vector<1x1x1xf32>,
    } else {
    }
    %c0 = arith.constant 0 : index
    %c0_1 = arith.constant 0 : index
    %3 = vector.load %arg2[%c0, %c0_1] : memref<8x16xf32, #tpu.memory_space<vmem>>, vector<8x16xf32>
    %c0_2 = arith.constant 0 : index
    %c0_3 = arith.constant 0 : index
    %4 = vector.load %arg3[%c0_2, %c0_3] : memref<8x1xi32, #tpu.memory_space<vmem>>, vector<8x1xi32>
    %cst = arith.constant dense<0xFF800000> : vector<8xf32>
    %5 = vector.multi_reduction <maximumf>, %3, %cst [1] : vector<8x16xf32> to vector<8xf32>
    %6 = vector.shape_cast %5 : vector<8xf32> to vector<8x1xf32>
    %7 = vector.broadcast %6 : vector<8x1xf32> to vector<8x16xf32>
    %8 = arith.subf %3, %7 : vector<8x16xf32>
    %9 = math.exp %8 : vector<8x16xf32>
    %cst_4 = arith.constant dense<0.000000e+00> : vector<8xf32>
    %10 = vector.multi_reduction <add>, %9, %cst_4 [1] : vector<8x16xf32> to vector<8xf32>
    %11 = vector.shape_cast %10 : vector<8xf32> to vector<8x1xf32>
    %12 = arith.mulf %9, %3 : vector<8x16xf32>
    %cst_5 = arith.constant dense<0.000000e+00> : vector<8xf32>
    %13 = vector.multi_reduction <add>, %12, %cst_5 [1] : vector<8x16xf32> to vector<8xf32>
    %14 = vector.shape_cast %13 : vector<8xf32> to vector<8x1xf32>
    %15 = tpu.iota {dimensions = array<i32: 1>} : vector<8x16xi32>
    %16 = vector.broadcast %4 : vector<8x1xi32> to vector<8x16xi32>
    %17 = arith.cmpi eq, %15, %16 : vector<8x16xi32>
    %cst_6 = arith.constant 0.000000e+00 : f32
    %18 = vector.broadcast %cst_6 : f32 to vector<8x16xf32>
    %19 = arith.select %17, %3, %18 : vector<8x16xi1>, vector<8x16xf32>
    %cst_7 = arith.constant dense<0.000000e+00> : vector<8xf32>
    %20 = vector.multi_reduction <add>, %19, %cst_7 [1] : vector<8x16xf32> to vector<8xf32>
    %21 = vector.shape_cast %20 : vector<8xf32> to vector<8x1xf32>
    %22 = tpu.reciprocal %11 : vector<8x1xf32> -> vector<8x1xf32>
    %23 = arith.mulf %14, %22 : vector<8x1xf32>
    %24 = arith.subf %23, %21 : vector<8x1xf32>
    %25 = tpu.iota {dimensions = array<i32: 0>} : vector<8x1xi32>
    %c2_i32 = arith.constant 2 : i32
    %26 = arith.muli %arg0, %c2_i32 : i32
    %27 = arith.addi %26, %arg1 : i32
    %c8_i32 = arith.constant 8 : i32
    %28 = arith.muli %27, %c8_i32 : i32
    %29 = vector.broadcast %28 : i32 to vector<8x1xi32>
    %30 = arith.addi %29, %25 : vector<8x1xi32>
    %c24_i32 = arith.constant 24 : i32
    %31 = vector.broadcast %c24_i32 : i32 to vector<8x1xi32>
    %32 = arith.cmpi slt, %30, %31 : vector<8x1xi32>
    %c2_i32_8 = arith.constant 2 : i32
    %c0_i32_9 = arith.constant 0 : i32
    %33 = arith.cmpi eq, %c2_i32_8, %c0_i32_9 : i32
    %c1_i32 = arith.constant 1 : i32
    %34 = arith.select %33, %c1_i32, %c2_i32_8 : i32
    %35 = vector.broadcast %34 : i32 to vector<8x1xi32>
    %36 = arith.remsi %25, %35 : vector<8x1xi32>
    %c0_i32_10 = arith.constant 0 : i32
    %37 = vector.broadcast %c0_i32_10 : i32 to vector<8x1xi32>
    %38 = arith.cmpi ne, %36, %37 : vector<8x1xi32>
    %c0_i32_11 = arith.constant 0 : i32
    %39 = vector.broadcast %c0_i32_11 : i32 to vector<8x1xi32>
    %40 = arith.cmpi slt, %36, %39 : vector<8x1xi32>
    %c0_i32_12 = arith.constant 0 : i32
    %41 = arith.cmpi slt, %34, %c0_i32_12 : i32
    %42 = vector.broadcast %41 : i1 to vector<8x1xi1>
    %43 = vector.broadcast %42 : vector<8x1xi1> to vector<8x1xi1>
    %44 = arith.xori %40, %43 : vector<8x1xi1>
    %45 = arith.andi %44, %38 : vector<8x1xi1>
    %46 = vector.broadcast %34 : i32 to vector<8x1xi32>
    %47 = arith.addi %36, %46 : vector<8x1xi32>
    %48 = arith.select %45, %47, %36 : vector<8x1xi1>, vector<8x1xi32>
    %c0_i32_13 = arith.constant 0 : i32
    %49 = vector.broadcast %c0_i32_13 : i32 to vector<8x1xi32>
    %50 = arith.cmpi eq, %48, %49 : vector<8x1xi32>
    %51 = arith.andi %32, %50 : vector<8x1xi1>
    %cst_14 = arith.constant 0.000000e+00 : f32
    %52 = vector.broadcast %cst_14 : f32 to vector<8x1xf32>
    %53 = arith.select %51, %24, %52 : vector<8x1xi1>, vector<8x1xf32>
    %cst_15 = arith.constant dense<true> : vector<8x1xi1>
    %54 = arith.xori %50, %cst_15 : vector<8x1xi1>
    %55 = arith.andi %32, %54 : vector<8x1xi1>
    %cst_16 = arith.constant 0.000000e+00 : f32
    %56 = vector.broadcast %cst_16 : f32 to vector<8x1xf32>
    %57 = arith.select %55, %24, %56 : vector<8x1xi1>, vector<8x1xf32>
    %c0_17 = arith.constant 0 : index
    %c0_18 = arith.constant 0 : index
    %c0_19 = arith.constant 0 : index
    %58 = vector.load %arg4[%c0_17, %c0_18, %c0_19] : memref<1x1x1xf32, #tpu.memory_space<vmem>>, vector<1x1x1xf32>
    %cst_20 = arith.constant dense<0.000000e+00> : vector<1xf32>
    %59 = vector.multi_reduction <add>, %53, %cst_20 [0] : vector<8x1xf32> to vector<1xf32>
    %60 = vector.shape_cast %59 : vector<1xf32> to vector<1x1xf32>
    %61 = vector.shape_cast %60 : vector<1x1xf32> to vector<1x1x1xf32>
    %62 = arith.addf %58, %61 : vector<1x1x1xf32>
    %c0_21 = arith.constant 0 : index
    %c0_22 = arith.constant 0 : index
    %c0_23 = arith.constant 0 : index
    %63 = vector.load %arg4[%c0_21, %c0_22, %c0_23] : memref<1x1x1xf32, #tpu.memory_space<vmem>>, vector<1x1x1xf32>
    tpu.vector_store %arg4[%c0_21, %c0_22, %c0_23], %62 {strides = array<i32>} : memref<1x1x1xf32, #tpu.memory_space<vmem>>, vector<1x1x1xf32>,
    %c0_24 = arith.constant 0 : index
    %c0_25 = arith.constant 0 : index
    %c0_26 = arith.constant 0 : index
    %64 = vector.load %arg5[%c0_24, %c0_25, %c0_26] : memref<1x1x1xf32, #tpu.memory_space<vmem>>, vector<1x1x1xf32>
    %cst_27 = arith.constant dense<0.000000e+00> : vector<1xf32>
    %65 = vector.multi_reduction <add>, %57, %cst_27 [0] : vector<8x1xf32> to vector<1xf32>
    %66 = vector.shape_cast %65 : vector<1xf32> to vector<1x1xf32>
    %67 = vector.shape_cast %66 : vector<1x1xf32> to vector<1x1x1xf32>
    %68 = arith.addf %64, %67 : vector<1x1x1xf32>
    %c0_28 = arith.constant 0 : index
    %c0_29 = arith.constant 0 : index
    %c0_30 = arith.constant 0 : index
    %69 = vector.load %arg5[%c0_28, %c0_29, %c0_30] : memref<1x1x1xf32, #tpu.memory_space<vmem>>, vector<1x1x1xf32>
    tpu.vector_store %arg5[%c0_28, %c0_29, %c0_30], %68 {strides = array<i32>} : memref<1x1x1xf32, #tpu.memory_space<vmem>>, vector<1x1x1xf32>,
    return
  }
  func.func @transform_0(%arg0: i32, %arg1: i32) -> (i32, i32) {
    %c2_i32 = arith.constant 2 : i32
    %0 = arith.muli %arg0, %c2_i32 : i32
    %1 = arith.addi %0, %arg1 : i32
    %c2_i32_0 = arith.constant 2 : i32
    %2 = arith.minsi %1, %c2_i32_0 : i32
    %c0_i32 = arith.constant 0 : i32
    %c0_i32_1 = arith.constant 0 : i32
    return %2, %c0_i32 : i32, i32
  }
  func.func @transform_1(%arg0: i32, %arg1: i32) -> (i32, i32) {
    %c2_i32 = arith.constant 2 : i32
    %0 = arith.muli %arg0, %c2_i32 : i32
    %1 = arith.addi %0, %arg1 : i32
    %c2_i32_0 = arith.constant 2 : i32
    %2 = arith.minsi %1, %c2_i32_0 : i32
    %c0_i32 = arith.constant 0 : i32
    %c0_i32_1 = arith.constant 0 : i32
    return %2, %c0_i32 : i32, i32
  }
  func.func @transform_2(%arg0: i32, %arg1: i32) -> (i32, i32, i32) {
    %c0_i32 = arith.constant 0 : i32
    %c0_i32_0 = arith.constant 0 : i32
    %c0_i32_1 = arith.constant 0 : i32
    return %arg0, %c0_i32, %c0_i32_0 : i32, i32, i32
  }
  func.func @transform_3(%arg0: i32, %arg1: i32) -> (i32, i32, i32) {
    %c0_i32 = arith.constant 0 : i32
    %c0_i32_0 = arith.constant 0 : i32
    %c0_i32_1 = arith.constant 0 : i32
    return %arg0, %c0_i32, %c0_i32_0 : i32, i32, i32
  }
}

</mosaic_0001>

<bundles_post_ra>
// kernel: tpu_custom_call.1
= control target key start
LH: loop header
LB: loop body
LE: loop exit
PB: predicated region body
PF: predicated region fallthrough
CT: control target
= control target key end

     0   :  { %s582_s12 = smov 0   ;;  %s584_s13 = smov 0   ;;  %s658_s0 = inlined_call_operand.vmem [shape: f32[24,16], index: 0, kind: input, shape index: {}]   ;;  %s659_s1 = inlined_call_operand.vmem [shape: s32[24,1], index: 1, kind: input, shape index: {}]   ;;  %s660_s2 = inlined_call_operand.vmem [shape: f32[2,1,1], index: 2, kind: output, shape index: {0}]   ;;  %s661_s3 = inlined_call_operand.vmem [shape: f32[2,1,1], index: 3, kind: output, shape index: {1}]  }
   0x1   :  { %s586_s14 = smov 0   ;;  %s588_s15 = smov 0  }
   0x2   :  { %s590_s16 = smov 0  }
   0x3 LB: > { %s23_s17 = sadd.s32 1, %s549_s14  ;;  %s26_s18 = sadd.s32 1, %s553_s15  ;;  %s557_s16 = sphi %s590_s16, %s14_s16   ;;  %s553_s15 = sphi %s588_s15, %s665_s15   ;;  %s549_s14 = sphi %s586_s14, %s664_s14   ;;  %s545_s13 = sphi %s584_s13, %s663_s13   ;;  %s541_s12 = sphi %s582_s12, %s662_s12  }
   0x4   : > { %p24_p0 = scmp.ge.s32.totalorder %s23_s17, 2  ;;  %p455_p1 = scmp.ge.s32.totalorder %s557_s16, 1 }
   0x5   : > { %p192_p2 = scmp.lt.s32.totalorder %s557_s16, 5 }
   0x6   : > { %s667_s17 = smov (%p24_p0, %s23_s17), 0  ;;  %s669_s18 = smov (!%p24_p0, %s26_s18), %s553_s15 }
   0x7   : > { %p193_p3 = pnand %p455_p1, %p192_p2  ;;  %p28_p4 = scmp.ge.s32.totalorder %s669_s18, 2 }
   0x8   : > { %s456_s19 = sshll.u32 (!%p193_p3), %s545_s13, 1  ;;  %p252_p5 = scmp.lt.s32.totalorder (!%p193_p3), %s545_s13, 1 }
   0x9   : > { %s671_s18 = smov (%p28_p4, %s669_s18), 0  ;;  %196 = sbr.rel (%p193_p3) target bundleno = 309 (0x135), region = 28 }
   0xa   : > { %s612_s20 = sadd.s32 (!%p193_p3), %s541_s12, %s456_s19  ;;  %p466_p7 = scmp.ne.s32.totalorder (!%p193_p3), %s541_s12, 0 }
   0xb   : > { %p230_p6 = scmp.lt.s32.totalorder (!%p193_p3), %s612_s20, 2 }
   0xe   : > { %s673_s13 = smov (!%p252_p5, %s545_s13), 1 }
   0xf   : > { %s231_s21 = scalar_select %p230_p6, %s612_s20, 2 }
  0x10   : > { %s619_s24 = scalar_lea.vmem %s660_s2, %s673_s13  ;;  %s624_s27 = scalar_lea.vmem %s661_s3, %s673_s13 }
  0x11   : > { %s675_s21 = smov (!%p230_p6, %s231_s21), 2  ;;  %261 = sbr.rel (%p466_p7) target bundleno = 25 (0x19), region = 32 }
  0x12   : > { %s460_s28 = sshll.u32 %s675_s21, 3 }
  0x13   : > { %s235_s4 = scalar_lea.vmem %s658_s0, %s460_s28  ;;  %s247_s7 = scalar_lea.vmem %s659_s1, %s460_s28 }
  0x16   : > { %vm262_vm0 = vcmask 0   ;;  %v559_v0 = vmov 0.0  }
  0x17   : > { %263 = vst.msk [vmem:[%s619_s24] sm:$0x1] %vm262_vm0, %v559_v0 }
  0x18   : > { %264 = vst.msk [vmem:[%s624_s27] sm:$0x1] %vm262_vm0, %v559_v0 }
  0x19 PF: > { %v265_v1 = vld [vmem:[%s235_s4] sm:$0xff]  ;;  %vm267_vm1 = vcmask 130048   ;;  %v560_v3 = vmov 0   ;;  %v281_v10 = vlaneseq  ;;  %s468_s8 = sshll.u32 %s612_s20, 3  ;;  %vm561_vm9 = vmmov 1  }
  0x1a   : > { %v268_v2 = vsel %vm267_vm1, %v265_v1, -inf  ;;  %514 = vset.pattern.permute.xlu0 %v560_v3  ;;  %v266_v4 = vld [vmem:[%s247_s7] sm:$0xff]  ;;  %v312_v21 = vstv %s468_s8  ;;  %vm341_vm13 = vcmask 0  }
  0x1b   : > { %269 = vmax.xlane.f32.xlu0 %v268_v2  ;;  %v282_v12 = vand.u32 127, %v281_v10  ;;  %v308_v18 = vshrl.u32 %v281_v10, 7 }
  0x1d   : > { %v319_v22 = vand.u32 1, %v308_v18  ;;  %v313_v25 = vadd.s32 %v312_v21, %v308_v18 }
  0x1e   : > { %v333_v48 = vld [vmem:[%s619_s24] sm:$0x1] }
  0x1f   : > { %vm327_vm4 = vcmp.eq.s32.totalorder %v319_v22, 0  ;;  %vm314_vm7 = vcmp.lt.s32.totalorder %v313_v25, 24  ;;  %v343_v49 = vld [vmem:[%s624_s27] sm:$0x1] }
  0x20   : > { %vm330_vm10 = vmxor %vm327_vm4, %vm561_vm9 }
  0x21   : > { %vm328_vm11 = vmand %vm314_vm7, %vm327_vm4 }
  0x22   : > { %vm331_vm12 = vmand %vm314_vm7, %vm330_vm10 }
  0x2f   : > { %284 = vperm.xlu0 %514, %v266_v4  }
  0x8e   : > { %v270_v5 = vpop.xlane.xlu0 %269 }
  0x8f   : > { %v271_v6 = vsub.f32 %v265_v1, %v270_v5 }
  0x91   : > { %v272_v7 = vmul.f32 1.442695, %v271_v6 }
  0x93   : > { %515 = vpow2.f32 %v272_v7 }
  0x99   : > { %v516_v8 = vpop.eup %515 }
  0x9a   : > { %v274_v9 = vsel %vm267_vm1, %v516_v8, 0.0  ;;  %v277_v11 = vmul.f32 %v516_v8, %v265_v1 }
  0x9b   : > { %275 = vadd.xlane.f32.xlu1 %v274_v9 }
  0x9c   : > { %v278_v14 = vsel %vm267_vm1, %v277_v11, 0.0 }
  0xa1   : > { %v285_v13 = vpop.permute.xlu0 %284 }
  0xa2   : > { %vm286_vm2 = vcmp.eq.s32.totalorder %v282_v12, %v285_v13 }
  0xa3   : > { %279 = vadd.xlane.f32.xlu1 %v278_v14  ;;  %v287_v15 = vsel %vm286_vm2, %v265_v1, 0.0 }
  0xa4   : > { %v288_v16 = vsel %vm267_vm1, %v287_v15, 0.0 }
  0xa5   : > { %289 = vadd.xlane.f32.xlu2 %v288_v16 }
 0x10e   : > { %v276_v17 = vpop.xlane.xlu1 %275 }
 0x10f   : > { %517 = vrcp.f32 %v276_v17  ;;  %v302_v24 = vand.u32 2147483648, %v276_v17  ;;  %v300_v27 = vand.u32 2147483647, %v276_v17  ;;  %vm296_vm5 = vweird.f32 %v276_v17 }
 0x111   : > { %v303_v29 = vor.u32 1.1754944e-38, %v302_v24  ;;  %vm301_vm8 = vcmp.eq.f32.partialorder %v300_v27, 8.507059e+37 }
 0x115   : > { %v518_v19 = vpop.eup %517 }
 0x116   : > { %v292_v20 = vmul.f32 %v518_v19, %v276_v17  ;;  %vm297_vm3 = vweird.f32 %v518_v19  ;;  %v280_v32 = vpop.xlane.xlu1 %279 }
 0x117   : > { %vm298_vm6 = vmor %vm296_vm5, %vm297_vm3 }
 0x118   : > { %v293_v23 = vsub.f32 1.0, %v292_v20  ;;  %v290_v33 = vpop.xlane.xlu2 %289 }
 0x11a   : > { %v294_v26 = vmul.f32 %v518_v19, %v293_v23 }
 0x11c   : > { %v295_v28 = vadd.f32 %v518_v19, %v294_v26 }
 0x11e   : > { %v299_v30 = vsel %vm298_vm6, %v518_v19, %v295_v28 }
 0x11f   : > { %v304_v31 = vsel %vm301_vm8, %v303_v29, %v299_v30 }
 0x120   : > { %v305_v34 = vmul.f32 %v304_v31, %v280_v32 }
 0x122   : > { %v306_v35 = vsub.f32 %v305_v34, %v290_v33 }
 0x124   : > { %v329_v36 = vsel %vm328_vm11, %v306_v35, 0.0  ;;  %v332_v37 = vsel %vm331_vm12, %v306_v35, 0.0 }
 0x125   : > { %v334_v38 = vrot.slane %v329_v36, 4  ;;  %v344_v39 = vrot.slane %v332_v37, 4 }
 0x127   : > { %v335_v40 = vadd.f32 %v334_v38, %v329_v36  ;;  %v345_v41 = vadd.f32 %v344_v39, %v332_v37 }
 0x129   : > { %v336_v42 = vrot.slane %v335_v40, 2  ;;  %v346_v43 = vrot.slane %v345_v41, 2 }
 0x12b   : > { %v337_v44 = vadd.f32 %v336_v42, %v335_v40  ;;  %v347_v45 = vadd.f32 %v346_v43, %v345_v41 }
 0x12d   : > { %v338_v46 = vrot.slane %v337_v44, 1  ;;  %v348_v47 = vrot.slane %v347_v45, 1 }
 0x12f   : > { %v339_v50 = vadd.f32 %v338_v46, %v337_v44  ;;  %v349_v51 = vadd.f32 %v348_v47, %v347_v45 }
 0x131   : > { %v340_v52 = vadd.f32 %v339_v50, %v333_v48  ;;  %v350_v53 = vadd.f32 %v349_v51, %v343_v49 }
 0x133   : > { %342 = vst.msk [vmem:[%s619_s24] sm:$0x1] %vm341_vm13, %v340_v52 }
 0x134   : > { %351 = vst.msk [vmem:[%s624_s27] sm:$0x1] %vm341_vm13, %v350_v53 }
 0x135 PF: > { %s14_s16 = sadd.s32 1, %s557_s16   ;;  %s662_s12 = smov %s549_s14 }
 0x136   : > { %p11_p8 = scmp.ge.s32.totalorder %s14_s16, 6   ;;  %s663_s13 = smov %s553_s15 }
 0x137   : > { %s664_s14 = smov %s667_s17  ;;  %s665_s15 = smov %s671_s18 }
 0x138   :  { %13 = sbr.rel (!%p11_p8) target bundleno = 3 (0x3), region = 77 }

</bundles_post_ra>
